<compile_context>
chip_gen: v5e
topology: v5e:2x2
jax: 0.10.0
libtpu: 0.0.40
codegen_flags: <defaults>
</compile_context>

<pallas_src>
import math
import functools

import jax
import jax.numpy as jnp
from jax.experimental import pallas as pl
from jax.experimental.pallas import tpu as pltpu


def _round_up(x: int, m: int) -> int:
    return ((x + m - 1) // m) * m


# ---------------------------------------------------------------------------
# Fused kernel: whole MLP in one invocation.
# ---------------------------------------------------------------------------
def _fused_mlp_kernel(x_ref, w_ref, b_ref, o_ref, *, n_layers: int):
    """x_ref: (Bpad, Dpad)  w_ref: (L, Dpad, Dpad) (in,out)  b_ref: (L, 1, Dpad)
       o_ref: (Bpad, Dpad). ReLU between hidden layers, none after the last."""
    h = x_ref[...]
    for l in range(n_layers):  # static trip count -> unrolled at trace time
        y = jnp.dot(h, w_ref[l], preferred_element_type=jnp.float32)
        y = y + b_ref[l]  # (1, Dpad) broadcasts over batch
        if l < n_layers - 1:
            y = jnp.maximum(y, 0.0)
        h = y
    o_ref[...] = h.astype(o_ref.dtype)


# ---------------------------------------------------------------------------
# Parameter packing (done once, outside the forward hot path).
# ---------------------------------------------------------------------------
def prepare_params(params, dimensions):
    """Pack PyTorch-style (out,in) weights into a padded (L, Dpad, Dpad) stack
    in (in, out) order and biases into (L, 1, Dpad). Zero padding is inert."""
    dpad = _round_up(max(dimensions), 128)
    L = len(params)
    w_stack = jnp.zeros((L, dpad, dpad), dtype=jnp.float32)
    b_stack = jnp.zeros((L, 1, dpad), dtype=jnp.float32)
    for i, (w, b) in enumerate(params):
        fan_out, fan_in = w.shape
        w_stack = w_stack.at[i, :fan_in, :fan_out].set(w.T)
        b_stack = b_stack.at[i, 0, :fan_out].set(b)
    return w_stack, b_stack, dpad


# ---------------------------------------------------------------------------
# Forward pass: one fused pallas_call.
# ---------------------------------------------------------------------------
@functools.partial(jax.jit, static_argnames=("n_layers", "d_out"))
def mlp_forward_fused(x, w_stack, b_stack, *, n_layers: int, d_out: int):
    B, Din = x.shape
    dpad = w_stack.shape[-1]
    Bpad = _round_up(B, 8)

    # Pad input once (zeros are inert through the whole padded MLP).
    x_p = jnp.zeros((Bpad, dpad), dtype=x.dtype).at[:B, :Din].set(x)

    kernel = functools.partial(_fused_mlp_kernel, n_layers=n_layers)

    flops = 2 * Bpad * dpad * dpad * n_layers
    bytes_accessed = 4 * (2 * Bpad * dpad + n_layers * (dpad * dpad + dpad))

    out_p = pl.pallas_call(
        kernel,
        out_shape=jax.ShapeDtypeStruct((Bpad, dpad), x.dtype),
        grid=(1,),
        in_specs=[
            pl.BlockSpec((Bpad, dpad), lambda i: (0, 0)),
            pl.BlockSpec((n_layers, dpad, dpad), lambda i: (0, 0, 0)),
            pl.BlockSpec((n_layers, 1, dpad), lambda i: (0, 0, 0)),
        ],
        out_specs=pl.BlockSpec((Bpad, dpad), lambda i: (0, 0)),
        compiler_params=pltpu.CompilerParams(
            dimension_semantics=("arbitrary",)),
        cost_estimate=pl.CostEstimate(
            flops=flops, transcendentals=0, bytes_accessed=bytes_accessed),
    )(x_p, w_stack, b_stack)

    return out_p[:B, :d_out]


# ---------------------------------------------------------------------------
# Init mirroring MLP.initialize(): layer 0 weight ~ N(0,1), later weights
# xavier_uniform, biases with default nn.Linear init U(-1/sqrt(fan_in), ...).
# ---------------------------------------------------------------------------
def init_params(key, dimensions):
    params = []
    for i in range(len(dimensions) - 1):
        fan_in, fan_out = dimensions[i], dimensions[i + 1]
        key, kw, kb = jax.random.split(key, 3)
        if i == 0:
            w = jax.random.normal(kw, (fan_out, fan_in), dtype=jnp.float32)
        else:
            limit = math.sqrt(6.0 / (fan_in + fan_out))
            w = jax.random.uniform(kw, (fan_out, fan_in), dtype=jnp.float32,
                                   minval=-limit, maxval=limit)
        bound = 1.0 / math.sqrt(fan_in)
        b = jax.random.uniform(kb, (fan_out,), dtype=jnp.float32,
                               minval=-bound, maxval=bound)
        params.append((w, b))
    return params


def mlp_reference(x, params):
    n = len(params)
    for i, (w, b) in enumerate(params):
        x = x @ w.T + b
        if i < n - 1:
            x = jnp.maximum(x, 0.0)
    return x


if __name__ == "__main__":
    key = jax.random.PRNGKey(0)
    dimensions = [32, 64, 64, 16]
    batch = 8

    kx, kp = jax.random.split(key)
    x = jax.random.normal(kx, (batch, dimensions[0]), dtype=jnp.float32)
    params = init_params(kp, dimensions)

    # One-time parameter packing (pre-transposed, padded, stacked).
    w_stack, b_stack, _ = prepare_params(params, dimensions)

    out = mlp_forward_fused(x, w_stack, b_stack,
                            n_layers=len(params), d_out=dimensions[-1])
    out = jax.block_until_ready(out)

    ref = mlp_reference(x, params)
    assert out.shape == (batch, dimensions[-1])
    assert jnp.allclose(out, ref, atol=2e-4, rtol=2e-4), "mismatch vs reference"

    print("KERNEL_OK")
</pallas_src>

<mosaic_0001>
module attributes {stable_mosaic.version = 11 : i64} {
  func.func @_fused_mlp_kernel(%arg0: i32, %arg1: memref<8x128xf32, #tpu.memory_space<vmem>>, %arg2: memref<3x128x128xf32, #tpu.memory_space<vmem>>, %arg3: memref<3x1x128xf32, #tpu.memory_space<vmem>>, %arg4: memref<8x128xf32, #tpu.memory_space<vmem>>) attributes {dimension_semantics = [#tpu.dimension_semantics<arbitrary>], iteration_bounds = array<i64: 1>, scalar_prefetch = 0 : i64, scratch_operands = 0 : i64, tpu.core_type = #tpu.core_type<tc>, window_params = [{pipeline_mode = #tpu.pipeline_mode<synchronous>, transform_indices = @transform_0, window_bounds = array<i64: 8, 128>}, {pipeline_mode = #tpu.pipeline_mode<synchronous>, transform_indices = @transform_1, window_bounds = array<i64: 3, 128, 128>}, {pipeline_mode = #tpu.pipeline_mode<synchronous>, transform_indices = @transform_2, window_bounds = array<i64: 3, 1, 128>}, {pipeline_mode = #tpu.pipeline_mode<synchronous>, transform_indices = @transform_3, window_bounds = array<i64: 8, 128>}]} {
    %c0 = arith.constant 0 : index
    %c0_0 = arith.constant 0 : index
    %0 = vector.load %arg1[%c0, %c0_0] : memref<8x128xf32, #tpu.memory_space<vmem>>, vector<8x128xf32>
    %c0_1 = arith.constant 0 : index
    %c0_2 = arith.constant 0 : index
    %c0_3 = arith.constant 0 : index
    %1 = vector.load %arg2[%c0_1, %c0_2, %c0_3] : memref<3x128x128xf32, #tpu.memory_space<vmem>>, vector<1x128x128xf32>
    %2 = vector.shape_cast %1 : vector<1x128x128xf32> to vector<128x128xf32>
    %cst = arith.constant dense<0.000000e+00> : vector<8x128xf32>
    %3 = tpu.matmul %0, %2, %cst {dimension_numbers = #tpu.dot_dimension_numbers<[1], [0], [0], [1], [0, 0, 1, 1], [], []>} : vector<8x128xf32>, vector<128x128xf32>, vector<8x128xf32> -> vector<8x128xf32>
    %c0_4 = arith.constant 0 : index
    %c0_5 = arith.constant 0 : index
    %c0_6 = arith.constant 0 : index
    %4 = vector.load %arg3[%c0_4, %c0_5, %c0_6] : memref<3x1x128xf32, #tpu.memory_space<vmem>>, vector<1x1x128xf32>
    %5 = vector.shape_cast %4 : vector<1x1x128xf32> to vector<1x128xf32>
    %6 = vector.broadcast %5 : vector<1x128xf32> to vector<8x128xf32>
    %7 = arith.addf %3, %6 : vector<8x128xf32>
    %cst_7 = arith.constant 0.000000e+00 : f32
    %8 = vector.broadcast %cst_7 : f32 to vector<8x128xf32>
    %9 = arith.maximumf %7, %8 : vector<8x128xf32>
    %c1 = arith.constant 1 : index
    %c0_8 = arith.constant 0 : index
    %c0_9 = arith.constant 0 : index
    %10 = vector.load %arg2[%c1, %c0_8, %c0_9] : memref<3x128x128xf32, #tpu.memory_space<vmem>>, vector<1x128x128xf32>
    %11 = vector.shape_cast %10 : vector<1x128x128xf32> to vector<128x128xf32>
    %cst_10 = arith.constant dense<0.000000e+00> : vector<8x128xf32>
    %12 = tpu.matmul %9, %11, %cst_10 {dimension_numbers = #tpu.dot_dimension_numbers<[1], [0], [0], [1], [0, 0, 1, 1], [], []>} : vector<8x128xf32>, vector<128x128xf32>, vector<8x128xf32> -> vector<8x128xf32>
    %c1_11 = arith.constant 1 : index
    %c0_12 = arith.constant 0 : index
    %c0_13 = arith.constant 0 : index
    %13 = vector.load %arg3[%c1_11, %c0_12, %c0_13] : memref<3x1x128xf32, #tpu.memory_space<vmem>>, vector<1x1x128xf32>
    %14 = vector.shape_cast %13 : vector<1x1x128xf32> to vector<1x128xf32>
    %15 = vector.broadcast %14 : vector<1x128xf32> to vector<8x128xf32>
    %16 = arith.addf %12, %15 : vector<8x128xf32>
    %cst_14 = arith.constant 0.000000e+00 : f32
    %17 = vector.broadcast %cst_14 : f32 to vector<8x128xf32>
    %18 = arith.maximumf %16, %17 : vector<8x128xf32>
    %c2 = arith.constant 2 : index
    %c0_15 = arith.constant 0 : index
    %c0_16 = arith.constant 0 : index
    %19 = vector.load %arg2[%c2, %c0_15, %c0_16] : memref<3x128x128xf32, #tpu.memory_space<vmem>>, vector<1x128x128xf32>
    %20 = vector.shape_cast %19 : vector<1x128x128xf32> to vector<128x128xf32>
    %cst_17 = arith.constant dense<0.000000e+00> : vector<8x128xf32>
    %21 = tpu.matmul %18, %20, %cst_17 {dimension_numbers = #tpu.dot_dimension_numbers<[1], [0], [0], [1], [0, 0, 1, 1], [], []>} : vector<8x128xf32>, vector<128x128xf32>, vector<8x128xf32> -> vector<8x128xf32>
    %c2_18 = arith.constant 2 : index
    %c0_19 = arith.constant 0 : index
    %c0_20 = arith.constant 0 : index
    %22 = vector.load %arg3[%c2_18, %c0_19, %c0_20] : memref<3x1x128xf32, #tpu.memory_space<vmem>>, vector<1x1x128xf32>
    %23 = vector.shape_cast %22 : vector<1x1x128xf32> to vector<1x128xf32>
    %24 = vector.broadcast %23 : vector<1x128xf32> to vector<8x128xf32>
    %25 = arith.addf %21, %24 : vector<8x128xf32>
    %c0_21 = arith.constant 0 : index
    %c0_22 = arith.constant 0 : index
    %26 = vector.load %arg4[%c0_21, %c0_22] : memref<8x128xf32, #tpu.memory_space<vmem>>, vector<8x128xf32>
    tpu.vector_store %arg4[%c0_21, %c0_22], %25 {strides = array<i32>} : memref<8x128xf32, #tpu.memory_space<vmem>>, vector<8x128xf32>,
    return
  }
  func.func @transform_0(%arg0: i32) -> (i32, i32) {
    %c0_i32 = arith.constant 0 : i32
    %c0_i32_0 = arith.constant 0 : i32
    %c0_i32_1 = arith.constant 0 : i32
    return %c0_i32, %c0_i32_0 : i32, i32
  }
  func.func @transform_1(%arg0: i32) -> (i32, i32, i32) {
    %c0_i32 = arith.constant 0 : i32
    %c0_i32_0 = arith.constant 0 : i32
    %c0_i32_1 = arith.constant 0 : i32
    %c0_i32_2 = arith.constant 0 : i32
    return %c0_i32, %c0_i32_0, %c0_i32_1 : i32, i32, i32
  }
  func.func @transform_2(%arg0: i32) -> (i32, i32, i32) {
    %c0_i32 = arith.constant 0 : i32
    %c0_i32_0 = arith.constant 0 : i32
    %c0_i32_1 = arith.constant 0 : i32
    %c0_i32_2 = arith.constant 0 : i32
    return %c0_i32, %c0_i32_0, %c0_i32_1 : i32, i32, i32
  }
  func.func @transform_3(%arg0: i32) -> (i32, i32) {
    %c0_i32 = arith.constant 0 : i32
    %c0_i32_0 = arith.constant 0 : i32
    %c0_i32_1 = arith.constant 0 : i32
    return %c0_i32, %c0_i32_0 : i32, i32
  }
}

</mosaic_0001>

<bundles_post_ra>
// kernel: mlp_forward_fused.1
= control target key start
LH: loop header
LB: loop body
LE: loop exit
PB: predicated region body
PF: predicated region fallthrough
CT: control target
= control target key end

     0   :  { %8 = vsyncpa [#allocation3], 0  ;;  %s279_s0 = inlined_call_operand.vmem [shape: f32[8,128], index: 0, kind: input, shape index: {}]   ;;  %s280_s1 = inlined_call_operand.hbm [shape: f32[3,128,128], index: 1, kind: input, shape index: {}]   ;;  %s281_s2 = inlined_call_operand.vmem [shape: f32[3,1,128], index: 2, kind: input, shape index: {}]   ;;  %s282_s3 = inlined_call_operand.hbm [shape: f32[8,128], index: 3, kind: output, shape index: {}]  }
   0x1   :  { %9 = vsyncpa [#allocation4], 0  ;;  %s16_s14 = sshll.u32 %s280_s1, 4  ;;  %s237_s15 = smov [#allocation2]   ;;  %s17_s14 = int_to_ptr.hbm [resolvable:$true] %s16_s14 }
   0x2   :  { %s18_s16 = sshll.u32 %s237_s15, 4  ;;  %s238_s17 = smov 128   ;;  %s19_s16 = int_to_ptr.vmem [resolvable:$true] %s18_s16 }
   0x3   :  { %s239_s18 = smov 8  }
   0x4   :  { %24 = dma.hbm_to_vmem [thread:$0]  %s17_s14, 6144, %s19_s16, [#allocation3], %s238_s17, %s238_s17, %s239_s18  }
   0x5   :  { %233 = dma.done.wait [#allocation3], 6144  }
   0x6   :  { %234 = vsyncadd [#allocation3], 4294961152  ;;  %v47_v0 = vld [vmem:[#allocation2 + $0x78] sm:$0xff]  ;;  %v46_v1 = vld [vmem:[#allocation2 + $0x70] sm:$0xff]  ;;  %s240_s25 = smov [#allocation5]   ;;  %s166_s29 = sshll.u32 %s282_s3, 4  ;;  %s167_s29 = int_to_ptr.hbm [resolvable:$true] %s166_s29 }
   0x7   :  { %52 = vmatpush.msra.mxu0 %v47_v0  ;;  %v45_v2 = vld [vmem:[#allocation2 + $0x68] sm:$0xff]  ;;  %v44_v3 = vld [vmem:[#allocation2 + $0x60] sm:$0xff]  ;;  %v89_v4 = vld [vmem:[#allocation2 + $0xf8] sm:$0xff]  ;;  %s164_s26 = sshll.u32 %s240_s25, 4  ;;  %s165_s26 = int_to_ptr.vmem [resolvable:$true] %s164_s26 }
   0x8   :  { %v43_v5 = vld [vmem:[#allocation2 + $0x58] sm:$0xff]  ;;  %95 = vmatpush.msra.mxu1 %v89_v4  ;;  %v88_v6 = vld [vmem:[#allocation2 + $0xf0] sm:$0xff]  ;;  %v87_v7 = vld [vmem:[#allocation2 + $0xe8] sm:$0xff] }
   0x9   :  { %53 = vmatpush.msra.mxu0 %v46_v1  ;;  %v42_v8 = vld [vmem:[#allocation2 + $0x50] sm:$0xff]  ;;  %v86_v9 = vld [vmem:[#allocation2 + $0xe0] sm:$0xff]  ;;  %v41_v10 = vld [vmem:[#allocation2 + $0x48] sm:$0xff] }
   0xa   :  { %96 = vmatpush.msra.mxu1 %v88_v6  ;;  %v85_v11 = vld [vmem:[#allocation2 + $0xd8] sm:$0xff]  ;;  %v40_v12 = vld [vmem:[#allocation2 + $0x40] sm:$0xff]  ;;  %v84_v13 = vld [vmem:[#allocation2 + $0xd0] sm:$0xff] }
   0xb   :  { %54 = vmatpush.msra.mxu0 %v45_v2  ;;  %v39_v14 = vld [vmem:[#allocation2 + $0x38] sm:$0xff]  ;;  %v83_v15 = vld [vmem:[#allocation2 + $0xc8] sm:$0xff]  ;;  %v38_v16 = vld [vmem:[#allocation2 + $0x30] sm:$0xff] }
   0xc   :  { %97 = vmatpush.msra.mxu1 %v87_v7  ;;  %v82_v17 = vld [vmem:[#allocation2 + $0xc0] sm:$0xff]  ;;  %v37_v18 = vld [vmem:[#allocation2 + $0x28] sm:$0xff]  ;;  %v81_v19 = vld [vmem:[#allocation2 + $0xb8] sm:$0xff] }
   0xd   :  { %55 = vmatpush.msra.mxu0 %v44_v3  ;;  %v36_v20 = vld [vmem:[#allocation2 + $0x20] sm:$0xff]  ;;  %v80_v21 = vld [vmem:[#allocation2 + $0xb0] sm:$0xff]  ;;  %v35_v22 = vld [vmem:[#allocation2 + $0x18] sm:$0xff] }
   0xe   :  { %98 = vmatpush.msra.mxu1 %v86_v9  ;;  %v79_v23 = vld [vmem:[#allocation2 + $0xa8] sm:$0xff]  ;;  %v34_v24 = vld [vmem:[#allocation2 + $0x10] sm:$0xff]  ;;  %v78_v25 = vld [vmem:[#allocation2 + $0xa0] sm:$0xff] }
   0xf   :  { %56 = vmatpush.msra.mxu0 %v43_v5  ;;  %v33_v26 = vld [vmem:[#allocation2 + $0x8] sm:$0xff]  ;;  %v77_v27 = vld [vmem:[#allocation2 + $0x98] sm:$0xff]  ;;  %v32_v28 = vld [vmem:[#allocation2] sm:$0xff] }
  0x10   :  { %99 = vmatpush.msra.mxu1 %v85_v11  ;;  %v31_v29 = vld [vmem:[%s279_s0] sm:$0xff]  ;;  %v76_v30 = vld [vmem:[#allocation2 + $0x90] sm:$0xff]  ;;  %v75_v31 = vld [vmem:[#allocation2 + $0x88] sm:$0xff] }
  0x11   :  { %57 = vmatpush.msra.mxu0 %v42_v8  ;;  %v74_v32 = vld [vmem:[#allocation2 + $0x80] sm:$0xff]  ;;  %v132_v33 = vld [vmem:[#allocation2 + $0x178] sm:$0xff]  ;;  %v131_v34 = vld [vmem:[#allocation2 + $0x170] sm:$0xff] }
  0x12   :  { %100 = vmatpush.msra.mxu1 %v84_v13  ;;  %138 = vmatpush.msra.mxu2 %v132_v33  ;;  %v130_v35 = vld [vmem:[#allocation2 + $0x168] sm:$0xff]  ;;  %v129_v36 = vld [vmem:[#allocation2 + $0x160] sm:$0xff]  ;;  %v128_v37 = vld [vmem:[#allocation2 + $0x158] sm:$0xff] }
  0x13   :  { %58 = vmatpush.msra.mxu0 %v41_v10  ;;  %v127_v38 = vld [vmem:[#allocation2 + $0x150] sm:$0xff]  ;;  %v126_v39 = vld [vmem:[#allocation2 + $0x148] sm:$0xff]  ;;  %v125_v40 = vld [vmem:[#allocation2 + $0x140] sm:$0xff] }
  0x14   :  { %101 = vmatpush.msra.mxu1 %v83_v15  ;;  %139 = vmatpush.msra.mxu2 %v131_v34  ;;  %v124_v41 = vld [vmem:[#allocation2 + $0x138] sm:$0xff]  ;;  %v123_v42 = vld [vmem:[#allocation2 + $0x130] sm:$0xff]  ;;  %v122_v43 = vld [vmem:[#allocation2 + $0x128] sm:$0xff] }
  0x15   :  { %59 = vmatpush.msra.mxu0 %v40_v12  ;;  %v121_v44 = vld [vmem:[#allocation2 + $0x120] sm:$0xff]  ;;  %v120_v45 = vld [vmem:[#allocation2 + $0x118] sm:$0xff]  ;;  %v119_v50 = vld [vmem:[#allocation2 + $0x110] sm:$0xff] }
  0x16   :  { %102 = vmatpush.msra.mxu1 %v82_v17  ;;  %140 = vmatpush.msra.mxu2 %v130_v35  ;;  %v182_v46 = vld [vmem:[%s281_s2] ss:$0 sm:$0xff]  ;;  %v118_v51 = vld [vmem:[#allocation2 + $0x108] sm:$0xff]  ;;  %v183_v53 = vld [vmem:[%s281_s2 + $0x1] ss:$0 sm:$0xff] }
  0x17   :  { %60 = vmatpush.msra.mxu0 %v39_v14  ;;  %v117_v52 = vld [vmem:[#allocation2 + $0x100] sm:$0xff] }
  0x18   :  { %103 = vmatpush.msra.mxu1 %v81_v19  ;;  %141 = vmatpush.msra.mxu2 %v129_v36  ;;  %v184_v57 = vld [vmem:[%s281_s2 + $0x2] ss:$0 sm:$0xff] }
  0x19   :  { %61 = vmatpush.msra.mxu0 %v38_v16 }
  0x1a   :  { %104 = vmatpush.msra.mxu1 %v80_v21  ;;  %142 = vmatpush.msra.mxu2 %v128_v37 }
  0x1b   :  { %62 = vmatpush.msra.mxu0 %v37_v18 }
  0x1c   :  { %105 = vmatpush.msra.mxu1 %v79_v23  ;;  %143 = vmatpush.msra.mxu2 %v127_v38 }
  0x1d   :  { %63 = vmatpush.msra.mxu0 %v36_v20 }
  0x1e   :  { %106 = vmatpush.msra.mxu1 %v78_v25  ;;  %144 = vmatpush.msra.mxu2 %v126_v39 }
  0x1f   :  { %64 = vmatpush.msra.mxu0 %v35_v22 }
  0x20   :  { %107 = vmatpush.msra.mxu1 %v77_v27  ;;  %145 = vmatpush.msra.mxu2 %v125_v40 }
  0x21   :  { %65 = vmatpush.msra.mxu0 %v34_v24 }
  0x22   :  { %108 = vmatpush.msra.mxu1 %v76_v30  ;;  %146 = vmatpush.msra.mxu2 %v124_v41 }
  0x23   :  { %66 = vmatpush.msra.mxu0 %v33_v26 }
  0x24   :  { %109 = vmatpush.msra.mxu1 %v75_v31  ;;  %147 = vmatpush.msra.mxu2 %v123_v42 }
  0x25   :  { %67 = vmatpush.msra.mxu0 %v32_v28 }
  0x26   :  { %68 = vmatmul.f32.vlgmr.msra.gmra.mxu0 %v31_v29  ;;  %110 = vmatpush.msra.mxu1 %v74_v32 }
  0x27   :  { %148 = vmatpush.msra.mxu2 %v122_v43 }
  0x29   :  { %149 = vmatpush.msra.mxu2 %v121_v44 }
  0x2b   :  { %150 = vmatpush.msra.mxu2 %v120_v45 }
  0x2d   :  { %151 = vmatpush.msra.mxu2 %v119_v50 }
  0x2f   :  { %152 = vmatpush.msra.mxu2 %v118_v51 }
  0x31   :  { %153 = vmatpush.msra.mxu2 %v117_v52 }
  0xa3   :  { %v69_v47 = vpop.f32.mrf.mxu0 }
  0xa4   :  { %v70_v48 = vadd.f32 %v182_v46, %v69_v47 }
  0xa6   :  { %v72_v49 = vmax.f32 %v70_v48, 0.0 }
  0xa8   :  { %111 = vmatmul.f32.vlgmr.msra.gmra.mxu1 %v72_v49 }
 0x125   :  { %v112_v54 = vpop.f32.mrf.mxu1 }
 0x126   :  { %v113_v55 = vadd.f32 %v183_v53, %v112_v54 }
 0x128   :  { %v115_v56 = vmax.f32 %v113_v55, 0.0 }
 0x12a   :  { %154 = vmatmul.f32.vlgmr.msra.gmra.mxu2 %v115_v56 }
 0x1ad   :  { %v155_v58 = vpop.f32.mrf.mxu2 }
 0x1ae   :  { %v156_v59 = vadd.f32 %v184_v57, %v155_v58 }
 0x1b0   :  { %158 = vst [vmem:[#allocation5] sm:$0xff] %v156_v59 }
 0x1b1   :  { %169 = dma.vmem_to_hbm [thread:$0]  %s165_s26, 128, %s167_s29, [#allocation4]  }
 0x1b2   :  { %235 = dma.done.wait [#allocation4], 128  }
 0x1b3   :  { %236 = vsyncadd [#allocation4], 4294967168 }
 0x1b4   :  { %174 = vsyncpa [#allocation3], 1 }
 0x1b5   :  { %175 = vsyncpa [#allocation4], 1 }

</bundles_post_ra>
